<compile_context>
chip_gen: v6e
topology: v6e:2x2x1
jax: 0.10.0
libtpu: 0.0.40
codegen_flags: <defaults>
</compile_context>

<pallas_src>
import jax
import jax.numpy as jnp
from jax.experimental import pallas as pl
from jax.experimental.pallas import tpu as pltpu


def _ff_kernel(x_ref, w1_ref, b1_ref, w2_ref, b2_ref, o_ref):
    # x_ref : (Bb, C, tile_s)  native dtype (f32), spatial on the 128-lane axis
    # w1_ref: (hidden, C)      bf16 (PyTorch conv1 weight, (out, in))
    # b1_ref: (hidden, 1)      f32
    # w2_ref: (C, hidden)      bf16, pre-scaled by 1/6 (hardswish fold)
    # b2_ref: (C, 1)           f32
    # o_ref : (Bb, C, tile_s)  output dtype (f32)
    Bb = x_ref.shape[0]
    w1 = w1_ref[...]
    b1 = b1_ref[...]
    w2 = w2_ref[...]
    b2 = b2_ref[...]

    # Short static unroll over the batch sub-tile: each iteration is two clean
    # 2-D MXU matmuls with f32 accumulation.
    for b in range(Bb):
        # In-kernel VPU cast (hidden under the tile DMA) instead of a separate
        # wrapper-side XLA cast pass over the whole activation tensor.
        x = x_ref[b].astype(w1.dtype)                           # (C, tile_s) bf16

        # First 1x1 conv: (hidden, C) @ (C, tile_s) -> (hidden, tile_s), f32 acc.
        h = jnp.dot(w1, x, preferred_element_type=jnp.float32) + b1

        # Hardswish with the 1/6 folded into W2:  h * relu6(h + 3)
        h = h * jnp.clip(h + 3.0, 0.0, 6.0)

        # TODO(synk): Dropout (p=0.0 / eval mode) is an identity -> omitted.

        # Second 1x1 conv: (C, hidden) @ (hidden, tile_s) -> (C, tile_s), f32 acc.
        y = jnp.dot(w2, h.astype(w2.dtype),
                    preferred_element_type=jnp.float32) + b2

        o_ref[b] = y.astype(o_ref.dtype)


def _pick_tile_s(s_pad, cap):
    """Largest multiple of 128 dividing s_pad and <= cap (s_pad is 128-aligned)."""
    best = 128
    t = 128
    while t <= min(s_pad, cap):
        if s_pad % t == 0:
            best = t
        t += 128
    return best


def _choose_batch_block(B, n_s, cap=8):
    """Batch sub-tile Bb: prefer an even total block count >= 2 (v7x: 2 TCs)."""
    candidates = [bb for bb in range(min(B, cap), 0, -1) if B % bb == 0]
    for bb in candidates:                      # even block count >= 2
        nb = (B // bb) * n_s
        if nb >= 2 and nb % 2 == 0:
            return bb
    for bb in candidates:                      # at least 2 blocks
        if (B // bb) * n_s >= 2:
            return bb
    return candidates[0] if candidates else 1


def feedforward_pallas(x_nchw, w1, b1, w2, b2, *, compute_dtype=jnp.bfloat16):
    """LeViT FeedForward forward pass (inference).

    x_nchw: (B, C, H, W)
    w1:     (hidden, C)  first 1x1 conv weight, PyTorch (out, in) layout
    b1:     (hidden,)
    w2:     (C, hidden)  second 1x1 conv weight, PyTorch (out, in) layout
    b2:     (C,)
    Returns (B, C, H, W) in x_nchw.dtype.
    """
    B, C, H, W = x_nchw.shape
    hidden = w1.shape[0]
    S = H * W
    S_pad = ((S + 127) // 128) * 128

    # Channels ride the sublanes, spatial positions the 128-lane axis (no
    # NCHW<->NHWC transposes).  One-time zero-pad of the spatial axis to a
    # 128-multiple guarantees lane-dense, unmasked vector stores.
    x_tok = x_nchw.reshape(B, C, S)
    if S_pad != S:
        x_tok = jnp.pad(x_tok, ((0, 0), (0, 0), (0, S_pad - S)))
    # NOTE: activations stay in their native dtype -> the bf16 cast happens
    # inside the kernel, not as a separate HBM pass.

    # Weights are tiny: cast once and fold hardswish's 1/6 into W2.
    w1_c = w1.astype(compute_dtype)
    w2_c = (w2 * (1.0 / 6.0)).astype(compute_dtype)
    b1_2d = b1.reshape(hidden, 1).astype(jnp.float32)
    b2_2d = b2.reshape(C, 1).astype(jnp.float32)

    # Generation-aware VMEM capacity (v7x: 64 MiB/TC; v5e/v6e: 128 MiB).
    try:
        vmem_cap = int(pltpu.get_tpu_info().vmem_capacity_bytes)
    except Exception:
        vmem_cap = 64 * 2**20                    # conservative (v7x-class)
    big_vmem = vmem_cap > 64 * 2**20

    tile_cap = 1024 if big_vmem else 512
    tile_s = _pick_tile_s(S_pad, tile_cap)
    n_s = S_pad // tile_s

    Bb = _choose_batch_block(B, n_s)
    grid = (B // Bb, n_s)

    # Deepen the activation pipeline only when there are enough grid steps and
    # the per-tile matmuls are small enough to expose DMA latency.
    deep_x = (grid[0] * grid[1] >= 4) and (C <= 128)

    x_item = jnp.dtype(x_nchw.dtype).itemsize
    c_item = jnp.dtype(compute_dtype).itemsize
    x_bufs = 3 if deep_x else 2

    # VMEM budget: pipelined x/out tiles + single-buffered weights + the f32
    # hidden/out intermediates; ~2x headroom, generation-aware hard cap.
    vmem_need = (x_bufs * Bb * C * tile_s * x_item        # x tiles
                 + 2 * Bb * C * tile_s * x_item           # out tiles
                 + 2 * C * hidden * c_item                # W1 + W2 (single-buffered)
                 + (hidden + C) * 4                       # biases (f32)
                 + 2 * Bb * hidden * tile_s * 4           # h (f32) + bf16 copy slack
                 + Bb * C * tile_s * 4)                   # y (f32) before store cast
    hard_cap = (100 * 2**20) if big_vmem else (48 * 2**20)
    vmem_limit = int(min(hard_cap, max(2 * vmem_need, 16 * 2**20)))

    # Advisory cost hint so XLA schedules surrounding ops around the custom call.
    n_tok = B * S_pad
    cost = pl.CostEstimate(
        flops=4 * n_tok * C * hidden,                      # two matmuls
        transcendentals=0,
        bytes_accessed=(n_tok * C * x_item                 # x (native dtype)
                        + n_tok * C * x_item               # out
                        + 2 * C * hidden * c_item          # W1 + W2
                        + 4 * (hidden + C)),               # biases (f32)
    )

    x_map = lambda bi, si: (bi, 0, si)
    if deep_x:
        x_spec = pl.BlockSpec((Bb, C, tile_s), x_map, pipeline_mode=pl.Buffered(3))
    else:
        x_spec = pl.BlockSpec((Bb, C, tile_s), x_map)

    # Constant-index operands: DMA'd once, single-buffered to reclaim VMEM.
    w1_spec = pl.BlockSpec((hidden, C), lambda bi, si: (0, 0),
                           pipeline_mode=pl.Buffered(1))
    b1_spec = pl.BlockSpec((hidden, 1), lambda bi, si: (0, 0),
                           pipeline_mode=pl.Buffered(1))
    w2_spec = pl.BlockSpec((C, hidden), lambda bi, si: (0, 0),
                           pipeline_mode=pl.Buffered(1))
    b2_spec = pl.BlockSpec((C, 1), lambda bi, si: (0, 0),
                           pipeline_mode=pl.Buffered(1))

    out = pl.pallas_call(
        _ff_kernel,
        out_shape=jax.ShapeDtypeStruct((B, C, S_pad), x_nchw.dtype),
        grid_spec=pltpu.PrefetchScalarGridSpec(
            num_scalar_prefetch=0,
            grid=grid,
            in_specs=[x_spec, w1_spec, b1_spec, w2_spec, b2_spec],
            out_specs=pl.BlockSpec((Bb, C, tile_s), x_map),
        ),
        compiler_params=pltpu.CompilerParams(
            dimension_semantics=("parallel", "parallel"),
            vmem_limit_bytes=vmem_limit,
        ),
        cost_estimate=cost,
    )(x_tok, w1_c, b1_2d, w2_c, b2_2d)

    if S_pad != S:
        out = out[:, :, :S]
    return out.reshape(B, C, H, W)


def feedforward_ref(x_nchw, w1, b1, w2, b2):
    """Pure-JAX f32 reference (same math, NCHW layout)."""
    B, C, H, W = x_nchw.shape
    x = x_nchw.reshape(B, C, H * W).astype(jnp.float32)
    h = jnp.einsum('oc,bcs->bos', w1, x) + b1[None, :, None]
    h = h * jnp.clip(h + 3.0, 0.0, 6.0) / 6.0
    y = jnp.einsum('oh,bhs->bos', w2, h) + b2[None, :, None]
    return y.reshape(B, C, H, W)


if __name__ == "__main__":
    # Small LeViT-style demo: dim=16, mult=2, 16x16 feature map (S=256 -> one
    # lane-dense 256-wide spatial tile; batch sub-tile chosen so the parallel
    # grid has an even block count).
    B, C, H, W = 2, 16, 16, 16
    mult = 2
    hidden = C * mult

    key = jax.random.PRNGKey(0)
    kx, k1, kb1, k2, kb2 = jax.random.split(key, 5)

    x = jax.random.normal(kx, (B, C, H, W), dtype=jnp.float32)

    # PyTorch Conv2d weights are (out, in, 1, 1); we keep the (out, in) matrix.
    w1 = jax.random.normal(k1, (hidden, C), dtype=jnp.float32) * 0.1
    b1 = jax.random.normal(kb1, (hidden,), dtype=jnp.float32) * 0.1
    w2 = jax.random.normal(k2, (C, hidden), dtype=jnp.float32) * 0.1
    b2 = jax.random.normal(kb2, (C,), dtype=jnp.float32) * 0.1

    out = feedforward_pallas(x, w1, b1, w2, b2)
    out = jax.block_until_ready(out)

    ref = feedforward_ref(x, w1, b1, w2, b2)
    assert out.shape == (B, C, H, W)
    # bf16 MXU operands with f32 accumulation -> slightly looser tolerance.
    assert jnp.allclose(out, ref, atol=2e-2, rtol=2e-2), (
        float(jnp.max(jnp.abs(out - ref))))

    print("KERNEL_OK")
</pallas_src>

<mosaic_0001>
module attributes {stable_mosaic.version = 11 : i64} {
  func.func @_ff_kernel(%arg0: i32, %arg1: i32, %arg2: memref<1x16x256xf32, #tpu.memory_space<vmem>>, %arg3: memref<32x16xbf16, #tpu.memory_space<vmem>>, %arg4: memref<32x1xf32, #tpu.memory_space<vmem>>, %arg5: memref<16x32xbf16, #tpu.memory_space<vmem>>, %arg6: memref<16x1xf32, #tpu.memory_space<vmem>>, %arg7: memref<1x16x256xf32, #tpu.memory_space<vmem>>) attributes {dimension_semantics = [#tpu.dimension_semantics<parallel>, #tpu.dimension_semantics<parallel>], iteration_bounds = array<i64: 2, 1>, scalar_prefetch = 0 : i64, scratch_operands = 0 : i64, tpu.core_type = #tpu.core_type<tc>, window_params = [{transform_indices = @transform_0, window_bounds = array<i64: 1, 16, 256>}, {pipeline_mode = #tpu.pipeline_mode<synchronous>, transform_indices = @transform_1, window_bounds = array<i64: 32, 16>}, {pipeline_mode = #tpu.pipeline_mode<synchronous>, transform_indices = @transform_2, window_bounds = array<i64: 32, 1>}, {pipeline_mode = #tpu.pipeline_mode<synchronous>, transform_indices = @transform_3, window_bounds = array<i64: 16, 32>}, {pipeline_mode = #tpu.pipeline_mode<synchronous>, transform_indices = @transform_4, window_bounds = array<i64: 16, 1>}, {transform_indices = @transform_5, window_bounds = array<i64: 1, 16, 256>}]} {
    %c0 = arith.constant 0 : index
    %c0_0 = arith.constant 0 : index
    %0 = vector.load %arg3[%c0, %c0_0] : memref<32x16xbf16, #tpu.memory_space<vmem>>, vector<32x16xbf16>
    %c0_1 = arith.constant 0 : index
    %c0_2 = arith.constant 0 : index
    %1 = vector.load %arg4[%c0_1, %c0_2] : memref<32x1xf32, #tpu.memory_space<vmem>>, vector<32x1xf32>
    %c0_3 = arith.constant 0 : index
    %c0_4 = arith.constant 0 : index
    %2 = vector.load %arg5[%c0_3, %c0_4] : memref<16x32xbf16, #tpu.memory_space<vmem>>, vector<16x32xbf16>
    %c0_5 = arith.constant 0 : index
    %c0_6 = arith.constant 0 : index
    %3 = vector.load %arg6[%c0_5, %c0_6] : memref<16x1xf32, #tpu.memory_space<vmem>>, vector<16x1xf32>
    %c0_7 = arith.constant 0 : index
    %c0_8 = arith.constant 0 : index
    %c0_9 = arith.constant 0 : index
    %4 = vector.load %arg2[%c0_7, %c0_8, %c0_9] : memref<1x16x256xf32, #tpu.memory_space<vmem>>, vector<1x16x256xf32>
    %5 = vector.shape_cast %4 : vector<1x16x256xf32> to vector<16x256xf32>
    %6 = arith.truncf %5 : vector<16x256xf32> to vector<16x256xbf16>
    %cst = arith.constant dense<0.000000e+00> : vector<32x256xf32>
    %7 = tpu.matmul %0, %6, %cst {dimension_numbers = #tpu.dot_dimension_numbers<[1], [0], [0], [1], [0, 0, 1, 1], [], []>} : vector<32x16xbf16>, vector<16x256xbf16>, vector<32x256xf32> -> vector<32x256xf32>
    %8 = vector.broadcast %1 : vector<32x1xf32> to vector<32x256xf32>
    %9 = arith.addf %7, %8 : vector<32x256xf32>
    %cst_10 = arith.constant 3.000000e+00 : f32
    %10 = vector.broadcast %cst_10 : f32 to vector<32x256xf32>
    %11 = arith.addf %9, %10 : vector<32x256xf32>
    %cst_11 = arith.constant 0.000000e+00 : f32
    %cst_12 = arith.constant 6.000000e+00 : f32
    %12 = vector.broadcast %cst_11 : f32 to vector<32x256xf32>
    %13 = arith.maximumf %12, %11 : vector<32x256xf32>
    %14 = vector.broadcast %cst_12 : f32 to vector<32x256xf32>
    %15 = arith.minimumf %14, %13 : vector<32x256xf32>
    %16 = arith.mulf %9, %15 : vector<32x256xf32>
    %17 = arith.truncf %16 : vector<32x256xf32> to vector<32x256xbf16>
    %cst_13 = arith.constant dense<0.000000e+00> : vector<16x256xf32>
    %18 = tpu.matmul %2, %17, %cst_13 {dimension_numbers = #tpu.dot_dimension_numbers<[1], [0], [0], [1], [0, 0, 1, 1], [], []>} : vector<16x32xbf16>, vector<32x256xbf16>, vector<16x256xf32> -> vector<16x256xf32>
    %19 = vector.broadcast %3 : vector<16x1xf32> to vector<16x256xf32>
    %20 = arith.addf %18, %19 : vector<16x256xf32>
    %c0_14 = arith.constant 0 : index
    %c0_15 = arith.constant 0 : index
    %c0_16 = arith.constant 0 : index
    %21 = vector.load %arg7[%c0_14, %c0_15, %c0_16] : memref<1x16x256xf32, #tpu.memory_space<vmem>>, vector<1x16x256xf32>
    %22 = vector.shape_cast %21 : vector<1x16x256xf32> to vector<16x256xf32>
    %23 = vector.shape_cast %20 : vector<16x256xf32> to vector<1x16x256xf32>
    tpu.vector_store %arg7[%c0_14, %c0_15, %c0_16], %23 {strides = array<i32>} : memref<1x16x256xf32, #tpu.memory_space<vmem>>, vector<1x16x256xf32>,
    return
  }
  func.func @transform_0(%arg0: i32, %arg1: i32) -> (i32, i32, i32) {
    %c0_i32 = arith.constant 0 : i32
    %c0_i32_0 = arith.constant 0 : i32
    return %arg0, %c0_i32, %arg1 : i32, i32, i32
  }
  func.func @transform_1(%arg0: i32, %arg1: i32) -> (i32, i32) {
    %c0_i32 = arith.constant 0 : i32
    %c0_i32_0 = arith.constant 0 : i32
    %c0_i32_1 = arith.constant 0 : i32
    return %c0_i32, %c0_i32_0 : i32, i32
  }
  func.func @transform_2(%arg0: i32, %arg1: i32) -> (i32, i32) {
    %c0_i32 = arith.constant 0 : i32
    %c0_i32_0 = arith.constant 0 : i32
    %c0_i32_1 = arith.constant 0 : i32
    return %c0_i32, %c0_i32_0 : i32, i32
  }
  func.func @transform_3(%arg0: i32, %arg1: i32) -> (i32, i32) {
    %c0_i32 = arith.constant 0 : i32
    %c0_i32_0 = arith.constant 0 : i32
    %c0_i32_1 = arith.constant 0 : i32
    return %c0_i32, %c0_i32_0 : i32, i32
  }
  func.func @transform_4(%arg0: i32, %arg1: i32) -> (i32, i32) {
    %c0_i32 = arith.constant 0 : i32
    %c0_i32_0 = arith.constant 0 : i32
    %c0_i32_1 = arith.constant 0 : i32
    return %c0_i32, %c0_i32_0 : i32, i32
  }
  func.func @transform_5(%arg0: i32, %arg1: i32) -> (i32, i32, i32) {
    %c0_i32 = arith.constant 0 : i32
    %c0_i32_0 = arith.constant 0 : i32
    return %arg0, %c0_i32, %arg1 : i32, i32, i32
  }
}

</mosaic_0001>

<bundles_post_ra>
// kernel: tpu_custom_call.1
= control target key start
LH: loop header
LB: loop body
LE: loop exit
PB: predicated region body
PF: predicated region fallthrough
CT: control target
= control target key end

     0   :  { %10 = vsyncpa [#allocation3], 0  ;;  %s897_s0 = inlined_call_operand.vmem [shape: f32[2,16,256], index: 0, kind: input, shape index: {}]   ;;  %s898_s1 = inlined_call_operand.vmem [shape: bf16[32,16], index: 1, kind: input, shape index: {}]   ;;  %s899_s2 = inlined_call_operand.vmem [shape: f32[32,1], index: 2, kind: input, shape index: {}]   ;;  %s900_s3 = inlined_call_operand.vmem [shape: bf16[16,32], index: 3, kind: input, shape index: {}]   ;;  %s901_s4 = inlined_call_operand.vmem [shape: f32[16,1], index: 4, kind: input, shape index: {}]   ;;  %s902_s5 = inlined_call_operand.hbm [shape: f32[2,16,256], index: 5, kind: output, shape index: {}]  }
   0x1   :  { %12 = vsyncpa [#allocation3 + $0x1], 0  ;;  %s756_s18 = smov 0   ;;  %s758_s19 = smov 0  }
   0x2   :  { %s760_s20 = smov 0   ;;  %s762_s21 = smov 0  }
   0x3   :  { %s764_s22 = smov 0   ;;  %s766_s23 = smov 0  }
   0x4 LB: > { %s560_s24 = sadd.s32 4294967295, %s720_s23   ;;  %s561_s25 = sadd.s32 4294967294, %s720_s23   ;;  %s720_s23 = sphi %s766_s23, %s18_s23   ;;  %s716_s22 = sphi %s764_s22, %s909_s22   ;;  %s712_s21 = sphi %s762_s21, %s908_s21   ;;  %s708_s20 = sphi %s760_s20, %s907_s20   ;;  %s704_s19 = sphi %s758_s19, %s906_s19   ;;  %s700_s18 = sphi %s756_s18, %s905_s18  }
   0x5   : > { %s30_s26 = sadd.s32 1, %s716_s22  ;;  %s151_s27 = sadd.s32 1, %s708_s20 }
   0x6   : > { %p32_p0 = scmp.ge.s32.totalorder %s30_s26, 2  ;;  %p161_p1 = scmp.ne.s32.totalorder %s708_s20, %s704_s19 }
   0x7   : > { %p162_p2 = scmp.eq.s32.totalorder %s560_s24, 1  ;;  %p167_p3 = scmp.ne.s32.totalorder %s704_s19, %s700_s18 }
   0x8   : > { %s911_s26 = smov (%p32_p0, %s30_s26), 0  ;;  %p168_p5 = scmp.eq.s32.totalorder %s561_s25, 1 }
   0x9   : > { %p796_p4 = por %p162_p2, %p161_p1  ;;  %s146_s29 = ssub.s32 %s716_s22, %s911_s26 }
   0xa   : > { %p564_p6 = scmp.ge.s32.totalorder %s720_s23, 1  ;;  %p149_p7 = scmp.eq.s32.totalorder %s146_s29, 0 }
   0xb   : > { %p803_p8 = por %p168_p5, %p167_p3  ;;  %p211_p9 = scmp.lt.s32.totalorder %s720_s23, 3 }
   0xc   : > { %s809_s6 = scalar_select %p149_p7, %s708_s20, %s151_s27  }
   0xd   : > { %p212_p10 = pnand %p564_p6, %p211_p9 }
   0xe   : > { %p244_p11 = scmp.lt.s32.totalorder (!%p212_p10), %s712_s21, 1  ;;  %s240_s15 = sand.u32 (!%p212_p10), 1, %s704_s19  }
   0xf   : > { %215 = sbr.rel (%p212_p10) target bundleno = 474 (0x1da), region = 40  ;;  %s565_s16 = sshll.u32 (!%p212_p10), %s240_s15, 5 }
  0x10   : > { %s242_s17 = scalar_lea.vmem (!%p212_p10), [#allocation2], %s565_s16  ;;  %s852_s8 = scalar_lea.sflag (!%p212_p10), [#allocation3], %s240_s15 }
  0x11   : > { %s481_s24 = sshll.u32 (!%p212_p10), %s242_s17, 4  ;;  %s845_s24 = int_to_ptr.vmem [resolvable:$true] %s481_s24 }
  0x12   : > { %s644_s9 = scalar_lea.vmem (!%p212_p10), %s845_s24, 512 }
  0x13   : > { %p645_p12 = scmp.ne.s32.totalorder (!%p212_p10), %s845_s24, %s644_s9 }
  0x14   : > { %v722_v0 = vmov 0   ;;  %s245_s7 = scalar_select %p244_p11, %s712_s21, 1  ;;  %v259_v1 = vld [vmem:[%s899_s2] sm:$0xff]  ;;  %v261_v2 = vld [vmem:[%s899_s2 + $0x10] sm:$0xff]  ;;  %v260_v3 = vld [vmem:[%s899_s2 + $0x8] sm:$0xff]  ;;  %vm303_vm0 = vcmask 130048  }
  0x15   : > { %342 = vmatprep.mubr.bf16.mxu0 %v722_v0  ;;  %640 = vset.pattern.permute.xlu1 %v722_v0  ;;  %v262_v4 = vld [vmem:[%s899_s2 + $0x18] sm:$0xff]  ;;  %v265_v11 = vld [vmem:[%s901_s4] sm:$0xff]  ;;  %v266_v12 = vld [vmem:[%s901_s4 + $0x8] sm:$0xff]  ;;  %vm414_vm1 = vcmask 261120   ;;  %p646_p13 = pnand %p645_p12, %p796_p4 }
  0x16   : > { %639 = vset.pattern.permute.xlu0 %v722_v0  ;;  %450 = vmatprep.mubr.bf16.mxu1 %v722_v0  ;;  %s579_s14 = sshll.u32 %s245_s7, 5  ;;  %v641_v13 = vld [vmem:[%s898_s1] sm:$0xff]   ;;  %v642_v14 = vld [vmem:[%s898_s1 + $0x8] sm:$0xff]  }
  0x17   : > { %275 = vperm.xlu1 %640, %v259_v1   ;;  %285 = vperm.xlu0 %639, %v261_v2   ;;  %s251_s25 = scalar_lea.vmem %s897_s0, %s579_s14  ;;  %p647_p0 = pneg %p646_p13 }
  0x18   : > { %v268_v5 = vld [vmem:[%s251_s25 + $0x8] sm:$0xff]  ;;  %v270_v6 = vld [vmem:[%s251_s25 + $0x18] sm:$0xff]  ;;  %v267_v7 = vld [vmem:[%s251_s25] sm:$0xff] }
  0x19   : > { %v272_v8 = vpack.c.bf16 %v270_v6, %v268_v5  ;;  %v269_v9 = vld [vmem:[%s251_s25 + $0x10] sm:$0xff]  ;;  %s580_s25 = sshll.u32 %s712_s21, 9  ;;  %s723_s21 = smov [#allocation2]  }
  0x1a   : > { %v271_v10 = vpack.c.bf16 %v269_v9, %v267_v7  ;;  %v643_v7 = vld [vmem:[%s900_s3] sm:$0xff]   ;;  %s850_s7 = scalar_lea.hbm %s902_s5, %s580_s25  ;;  %s648_s10 = sshll.u32 %s723_s21, 4  ;;  %s649_s10 = int_to_ptr.vmem [resolvable:$false] %s648_s10 }
  0x1b   : > { %280 = vperm.xlu1 %640, %v260_v3   ;;  %290 = vperm.xlu0 %639, %v262_v4   ;;  %s650_s11 = scalar_lea.vmem %s649_s10, 1024  ;;  %p651_p1 = scmp.lt.s32.totalorder %s845_s24, %s649_s10 }
  0x1c   : > { %324 = vmatprep.subr.bf16.mxu0 %v272_v8  ;;  %p652_p2 = scmp.lt.s32.totalorder %s650_s11, %s644_s9 }
  0x1d   : > { %325 = vmatpush1.bf16.msra.mxu0 %v271_v10 }
  0x1e   : > { %p653_p3 = por %p652_p2, %p651_p1 }
  0x1f   : > { %401 = vperm.xlu0 %639, %v265_v11   ;;  %406 = vperm.xlu1 %640, %v266_v12  }
  0x20   : > { %570 = vmatmul.mubr.msk.bf16.vlgmr.msra.gmra.mxu0 %vm303_vm0, %v641_v13  ;;  %p654_p5 = pnand %p653_p3, %p647_p0 }
  0x21   : > { %352 = vmatprep.mubr.bf16.mxu0 %v722_v0 }
  0x28   : > { %571 = vmatmul.mubr.msk.bf16.gmra.mxu0 %vm303_vm0, %v642_v14 }
  0x92   : > { %v276_v15 = vpop.permute.xlu1 %275  ;;  %v286_v19 = vpop.permute.xlu0 %285 }
  0x96   : > { %v281_v20 = vpop.permute.xlu1 %280  ;;  %v291_v31 = vpop.permute.xlu0 %290 }
  0x9a   : > { %v402_v8 = vpop.permute.xlu0 %401  ;;  %v407_v13 = vpop.permute.xlu1 %406 }
  0xe0   : > { %v344_v16 = vpop.f32.mrf.mxu0 }
  0xe1   : > { %v345_v30 = vadd.f32 %v344_v16, %v276_v15 }
  0xe2   : > { %v346_v17 = vpop.f32.mrf.mxu0 }
  0xe3   : > { %v347_v24 = vadd.f32 %v346_v17, %v276_v15  ;;  %v363_v43 = vadd.f32 3.0, %v345_v30 }
  0xe4   : > { %v348_v18 = vpop.f32.mrf.mxu0 }
  0xe5   : > { %v349_v25 = vadd.f32 %v348_v18, %v281_v20  ;;  %v364_v34 = vadd.f32 3.0, %v347_v24  ;;  %v371_v53 = vmax.f32 %v363_v43, 0.0 }
  0xe6   : > { %v350_v21 = vpop.f32.mrf.mxu0 }
  0xe7   : > { %v351_v22 = vadd.f32 %v350_v21, %v281_v20  ;;  %v365_v37 = vadd.f32 3.0, %v349_v25  ;;  %v372_v45 = vmax.f32 %v364_v34, 0.0  ;;  %v379_v62 = vmin.f32 %v371_v53, 6.0 }
  0xe8   : > { %v354_v23 = vpop.f32.mrf.mxu0 }
  0xe9   : > { %v355_v26 = vadd.f32 %v354_v23, %v286_v19  ;;  %v366_v28 = vadd.f32 3.0, %v351_v22  ;;  %v373_v48 = vmax.f32 %v365_v37, 0.0  ;;  %v380_v55 = vmin.f32 %v372_v45, 6.0 }
  0xea   : > { %v356_v27 = vpop.f32.mrf.mxu0  ;;  %v387_v5 = vmul.f32 %v379_v62, %v345_v30 }
  0xeb   : > { %v357_v29 = vadd.f32 %v356_v27, %v286_v19  ;;  %v367_v32 = vadd.f32 3.0, %v355_v26  ;;  %v374_v39 = vmax.f32 %v366_v28, 0.0  ;;  %v381_v57 = vmin.f32 %v373_v48, 6.0 }
  0xec   : > { %v358_v33 = vpop.f32.mrf.mxu0  ;;  %v388_v0 = vmul.f32 %v380_v55, %v347_v24 }
  0xed   : > { %v368_v35 = vadd.f32 3.0, %v357_v29  ;;  %v359_v36 = vadd.f32 %v358_v33, %v291_v31  ;;  %v375_v44 = vmax.f32 %v367_v32, 0.0  ;;  %v382_v49 = vmin.f32 %v374_v39, 6.0 }
  0xee   : > { %v360_v38 = vpop.f32.mrf.mxu0  ;;  %v389_v2 = vmul.f32 %v381_v57, %v349_v25 }
  0xef   : > { %v376_v40 = vmax.f32 %v368_v35, 0.0  ;;  %v369_v41 = vadd.f32 3.0, %v359_v36  ;;  %v361_v42 = vadd.f32 %v360_v38, %v291_v31  ;;  %v383_v54 = vmin.f32 %v375_v44, 6.0 }
  0xf0   : > { %v390_v59 = vmul.f32 %v382_v49, %v351_v22  ;;  %v395_v6 = vpack.c.bf16 %v389_v2, %v387_v5 }
  0xf1   : > { %v377_v46 = vmax.f32 %v369_v41, 0.0  ;;  %v370_v47 = vadd.f32 3.0, %v361_v42  ;;  %v384_v50 = vmin.f32 %v376_v40, 6.0  ;;  %v391_v63 = vmul.f32 %v383_v54, %v355_v26 }
  0xf2   : > { %v396_v4 = vpack.c.bf16 %v390_v59, %v388_v0 }
  0xf3   : > { %v385_v51 = vmin.f32 %v377_v46, 6.0  ;;  %v378_v52 = vmax.f32 %v370_v47, 0.0  ;;  %v392_v60 = vmul.f32 %v384_v50, %v357_v29 }
  0xf5   : > { %v386_v56 = vmin.f32 %v378_v52, 6.0  ;;  %v393_v58 = vmul.f32 %v385_v51, %v359_v36 }
  0xf7   : > { %v394_v61 = vmul.f32 %v386_v56, %v361_v42  ;;  %v397_v3 = vpack.c.bf16 %v393_v58, %v391_v63 }
  0xf9   : > { %v398_v1 = vpack.c.bf16 %v394_v61, %v392_v60 }
  0xfb   : > { %430 = vmatprep.subr.bf16.mxu1 %v398_v1 }
  0xfc   : > { %431 = vmatpush1.bf16.msra.mxu1 %v397_v3 }
  0xfd   : > { %432 = vmatprep.subr.bf16.mxu1 %v396_v4 }
 0x100   : > { %433 = vmatpush1.bf16.msra.mxu1 %v395_v6 }
 0x103   : > { %573 = vmatmul.mubr.msk.bf16.vlgmr.msra.gmra.mxu1 %vm414_vm1, %v643_v7 }
 0x1c3   : > { %v452_v9 = vpop.f32.mrf.mxu1 }
 0x1c4   : > { %v453_v10 = vadd.f32 %v452_v9, %v402_v8 }
 0x1c5   : > { %v454_v11 = vpop.f32.mrf.mxu1 }
 0x1c6   : > { %461 = vst [vmem:[%s242_s17] sm:$0xff] %v453_v10  ;;  %v455_v12 = vadd.f32 %v454_v11, %v402_v8 }
 0x1c7   : > { %v456_v14 = vpop.f32.mrf.mxu1 }
 0x1c8   : > { %462 = vst [vmem:[%s242_s17 + $0x8] sm:$0xff] %v455_v12  ;;  %v457_v15 = vadd.f32 %v456_v14, %v407_v13 }
 0x1c9   : > { %v458_v16 = vpop.f32.mrf.mxu1 }
 0x1ca   : > { %463 = vst [vmem:[%s242_s17 + $0x10] sm:$0xff] %v457_v15  ;;  %v459_v17 = vadd.f32 %v458_v16, %v407_v13 }
 0x1cc   : > { %464 = vst [vmem:[%s242_s17 + $0x18] sm:$0xff] %v459_v17 }
 0x1cd   : > { %657 = shalt.err (!%p654_p5)
}
 0x1ce   : > { %s658_s12 = scalar_lea.hbm %s850_s7, 512  ;;  %s662_s15 = scalar_lea.hbm %s902_s5, 1024 }
 0x1cf   : > { %p659_p6 = scmp.ne.s32.totalorder %s850_s7, %s658_s12  ;;  %p663_p10 = scmp.lt.s32.totalorder %s850_s7, %s902_s5 }
 0x1d0   : > { %p664_p11 = scmp.lt.s32.totalorder %s662_s15, %s658_s12 }
 0x1d1   : > { %p660_p7 = pnand %p659_p6, %p796_p4 }
 0x1d2   : > { %p665_p12 = por %p664_p11, %p663_p10 }
 0x1d3   : > { %p661_p9 = pneg %p660_p7 }
 0x1d5   : > { %p666_p13 = pnand %p665_p12, %p661_p9 }
 0x1d7   : > { %669 = shalt.err (!%p666_p13)
}
 0x1d8   : > { %s724_s25 = smov 256   ;;  %s725_s27 = smov 16  }
 0x1d9   : > { %581 = dma.vmem_to_hbm [thread:$0]  (%p796_p4), %s845_s24, 512, %s850_s7, %s852_s8, %s724_s25, %s724_s25, %s725_s27  }
 0x1da PF: > { %p587_p0 = scmp.ge.s32.totalorder %s720_s23, 2  ;;  %s496_s29 = sand.u32 1, %s700_s18  }
 0x1db   : > { %s497_s9 = scalar_lea.sflag [#allocation3], %s496_s29 }
 0x1dc   : > { %p584_p1 = pnand %p587_p0, %p803_p8 }
 0x1de   : > { %p585_p2 = pneg %p584_p1 }
 0x1e0   : > { %695 = dma.done.wait (%p585_p2), %s497_s9, 512  }
 0x1e1   : > { %697 = vsyncadd (%p585_p2), %s497_s9, 4294966784  ;;  %s18_s23 = sadd.s32 1, %s720_s23   ;;  %s905_s18 = smov %s704_s19 }
 0x1e2   : > { %p15_p3 = scmp.ge.s32.totalorder %s18_s23, 4   ;;  %s906_s19 = smov %s708_s20 }
 0x1e3   : > { %s907_s20 = smov %s809_s6  ;;  %s908_s21 = smov %s716_s22 }
 0x1e4   : > { %s909_s22 = smov %s911_s26  ;;  %17 = sbr.rel (!%p15_p3) target bundleno = 4 (0x4), region = 75 }
 0x1e9   :  { %502 = vsyncpa [#allocation3], 1 }
 0x1ea   :  { %504 = vsyncpa [#allocation3 + $0x1], 1 }

</bundles_post_ra>
